<compile_context>
chip_gen: v5e
topology: v5e:2x2
jax: 0.10.0
libtpu: 0.0.40
codegen_flags: <defaults>
</compile_context>

<pallas_src>
import jax
import jax.numpy as jnp
from jax.experimental import pallas as pl
from jax.experimental.pallas import tpu as pltpu


def _round_up(x, m):
    return (x + m - 1) // m * m


def _encoder_lstm_kernel(ids_ref,             # SMEM [B] int32   (scalar prefetch)
                         h_ref, c_ref,        # VMEM [B, H] f32
                         emb_ref,             # VMEM [V, Ep] f32 (cols E:Ep zero)
                         wcat_ref,            # VMEM [Ep+Hp, 4*G] bf16  ([W_ih; W_hh], pre-transposed)
                         b_ref,               # VMEM [1, 4*G] f32       (b_ih + b_hh)
                         hout_ref, cout_ref,  # VMEM [B, H] f32
                         xh_ref):             # scratch VMEM [B, Ep+Hp] f32
    B, H = h_ref.shape
    V, Ep = emb_ref.shape
    G = wcat_ref.shape[1] // 4                # gate stride (H if compact, Hp if padded)
    Hp = xh_ref.shape[1] - Ep

    # --- Embedding gather: dynamic row reads from the VMEM-resident table. ---
    for b in range(B):                        # B is small & static -> unrolled
        idx = jnp.clip(ids_ref[b], 0, V - 1)  # nn.Embedding would raise; we clamp
        xh_ref[b:b + 1, 0:Ep] = emb_ref[pl.ds(idx, 1), :]

    # h goes straight into the xh slab (no concatenate / extra copy).
    xh_ref[:, Ep:Ep + H] = h_ref[...]
    if Hp > H:                                # zero the K padding once (static branch)
        xh_ref[:, Ep + H:] = jnp.zeros((B, Hp - H), xh_ref.dtype)

    # --- Fused LSTM-cell projection: one MXU pass over [x, h] @ [W_ih; W_hh]. ---
    gates = jnp.dot(xh_ref[...].astype(jnp.bfloat16), wcat_ref[...],
                    preferred_element_type=jnp.float32) + b_ref[...]   # [B, 4*G] f32

    i_g = jax.nn.sigmoid(gates[:, 0 * G:0 * G + H])
    f_g = jax.nn.sigmoid(gates[:, 1 * G:1 * G + H])
    g_g = jnp.tanh(gates[:, 2 * G:2 * G + H])
    o_g = jax.nn.sigmoid(gates[:, 3 * G:3 * G + H])

    c_new = f_g * c_ref[...] + i_g * g_g
    h_new = o_g * jnp.tanh(c_new)

    hout_ref[...] = h_new
    cout_ref[...] = c_new


def init_params(key, input_size, embedding_size, hidden_size):
    """Raw fp32 parameters (shapes match nn.Embedding / nn.LSTM, pre-transposed)."""
    k_emb, k_ih, k_hh, k_bih, k_bhh = jax.random.split(key, 5)
    bound = 1.0 / jnp.sqrt(hidden_size)
    emb = jax.random.normal(k_emb, (input_size, embedding_size), jnp.float32)
    # PyTorch stores W_ih [4H, E], W_hh [4H, H]; we keep them transposed.
    w_ih = jax.random.uniform(k_ih, (embedding_size, 4 * hidden_size),
                              jnp.float32, -bound, bound)
    w_hh = jax.random.uniform(k_hh, (hidden_size, 4 * hidden_size),
                              jnp.float32, -bound, bound)
    b_ih = jax.random.uniform(k_bih, (4 * hidden_size,), jnp.float32, -bound, bound)
    b_hh = jax.random.uniform(k_bhh, (4 * hidden_size,), jnp.float32, -bound, bound)
    return {"emb": emb, "w_ih": w_ih, "w_hh": w_hh,
            "b": (b_ih + b_hh).reshape(1, 4 * hidden_size)}


def pack_params(params, embedding_size, hidden_size):
    """One-time host-side packing.

    * table padded to Ep lanes (fp32, VMEM-resident at run time)
    * [W_ih; W_hh] stacked into a single bf16 [Ep+Hp, 4*G] matrix
    * compact gate packing (G = H) when 4*H is already a multiple of 128,
      otherwise per-gate padding (G = Hp)."""
    E, H = embedding_size, hidden_size
    Ep, Hp = _round_up(E, 128), _round_up(H, 128)
    G = H if (4 * H) % 128 == 0 else Hp

    emb = params["emb"]
    V = emb.shape[0]
    emb_p = jnp.zeros((V, Ep), jnp.float32).at[:, :E].set(emb)

    wcat = jnp.zeros((Ep + Hp, 4 * G), jnp.float32)
    bias = jnp.zeros((1, 4 * G), jnp.float32)
    w_ih, w_hh, b = params["w_ih"], params["w_hh"], params["b"]
    for k in range(4):
        wcat = wcat.at[:E, k * G:k * G + H].set(w_ih[:, k * H:(k + 1) * H])
        wcat = wcat.at[Ep:Ep + H, k * G:k * G + H].set(w_hh[:, k * H:(k + 1) * H])
        bias = bias.at[:, k * G:k * G + H].set(b[:, k * H:(k + 1) * H])
    return {"emb": emb_p, "wcat": wcat.astype(jnp.bfloat16), "b": bias,
            "E": E, "H": H, "Ep": Ep, "Hp": Hp, "G": G, "V": V}


def encoder_forward(input_ids, hidden_state, packed):
    """Mirrors Encoder.forward: returns (output, (h_n, c_n))."""
    h0, c0 = hidden_state
    B = int(input_ids.shape[0])
    H, Ep, Hp, G, V = packed["H"], packed["Ep"], packed["Hp"], packed["G"], packed["V"]
    Kp = Ep + Hp

    table_bytes = V * Ep * 4
    if table_bytes > 4 * 1024 * 1024:
        # TODO(synk): large-vocab path — keep the table in HBM (memory_space=pl.ANY) and
        # gather rows with a single shared-semaphore async-copy batch instead of VMEM residency.
        raise NotImplementedError("Embedding table too large for the VMEM-resident kernel")

    ids = input_ids.astype(jnp.int32)
    h = h0.reshape(B, H)
    c = c0.reshape(B, H)

    def fullspec(shape):
        # index_map receives (grid idx, scalar-prefetch ref)
        return pl.BlockSpec(shape, lambda i, ids_ref: (0,) * len(shape))

    h_new, c_new = pl.pallas_call(
        _encoder_lstm_kernel,
        out_shape=[jax.ShapeDtypeStruct((B, H), jnp.float32),
                   jax.ShapeDtypeStruct((B, H), jnp.float32)],
        grid_spec=pltpu.PrefetchScalarGridSpec(
            num_scalar_prefetch=1,
            grid=(1,),
            in_specs=[
                fullspec((B, H)),            # h
                fullspec((B, H)),            # c
                fullspec((V, Ep)),           # embedding table (VMEM resident)
                fullspec((Kp, 4 * G)),       # packed [W_ih; W_hh]
                fullspec((1, 4 * G)),        # bias
            ],
            out_specs=[fullspec((B, H)), fullspec((B, H))],
            scratch_shapes=[pltpu.VMEM((B, Kp), jnp.float32)]),   # xh slab
        compiler_params=pltpu.CompilerParams(
            dimension_semantics=("arbitrary",),
            vmem_limit_bytes=32 * 1024 * 1024),
    )(ids, h, c, packed["emb"], packed["wcat"], packed["b"])

    output = h_new.reshape(1, B, H)          # seq_len = 1
    return output, (h_new.reshape(1, B, H), c_new.reshape(1, B, H))


def init_states(batch_size, hidden_size):
    # The single-layer LSTM state as [num_layers=1, B, H].
    return (jnp.zeros((1, batch_size, hidden_size), jnp.float32),
            jnp.zeros((1, batch_size, hidden_size), jnp.float32))


def reference_forward(input_ids, hidden_state, params):
    """Pure-JAX fp32 reference of the same forward pass."""
    h0, c0 = hidden_state
    B = input_ids.shape[0]
    H = params["w_hh"].shape[0]
    x = params["emb"][input_ids]
    h = h0.reshape(B, H)
    c = c0.reshape(B, H)
    gates = x @ params["w_ih"] + h @ params["w_hh"] + params["b"]
    i = jax.nn.sigmoid(gates[:, 0 * H:1 * H])
    f = jax.nn.sigmoid(gates[:, 1 * H:2 * H])
    g = jnp.tanh(gates[:, 2 * H:3 * H])
    o = jax.nn.sigmoid(gates[:, 3 * H:4 * H])
    c_new = f * c + i * g
    h_new = o * jnp.tanh(c_new)
    return h_new.reshape(1, B, H), (h_new.reshape(1, B, H), c_new.reshape(1, B, H))


if __name__ == "__main__":
    input_size = 64        # vocab
    embedding_size = 48
    hidden_size = 32
    batch = 6

    key = jax.random.PRNGKey(0)
    k_params, k_ids, k_h, k_c = jax.random.split(key, 4)
    params = init_params(k_params, input_size, embedding_size, hidden_size)
    packed = pack_params(params, embedding_size, hidden_size)

    input_ids = jax.random.randint(k_ids, (batch,), 0, input_size, jnp.int32)
    h0 = 0.1 * jax.random.normal(k_h, (1, batch, hidden_size), jnp.float32)
    c0 = 0.1 * jax.random.normal(k_c, (1, batch, hidden_size), jnp.float32)
    hidden_state = (h0, c0)

    output, (h_n, c_n) = encoder_forward(input_ids, hidden_state, packed)
    jax.block_until_ready((output, h_n, c_n))

    ref_out, (ref_h, ref_c) = reference_forward(input_ids, hidden_state, params)

    assert output.shape == (1, batch, hidden_size)
    assert h_n.shape == (1, batch, hidden_size)
    assert c_n.shape == (1, batch, hidden_size)
    # bf16 matmul inputs with fp32 accumulation -> small deviation from fp32 reference.
    assert jnp.allclose(output, ref_out, atol=5e-2, rtol=5e-2)
    assert jnp.allclose(c_n, ref_c, atol=5e-2, rtol=5e-2)
    print("KERNEL_OK")
</pallas_src>

<mosaic_0001>
module attributes {stable_mosaic.version = 11 : i64} {
  func.func @_encoder_lstm_kernel(%arg0: i32, %arg1: memref<6xi32, #tpu.memory_space<smem>>, %arg2: memref<6x32xf32, #tpu.memory_space<vmem>>, %arg3: memref<6x32xf32, #tpu.memory_space<vmem>>, %arg4: memref<64x128xf32, #tpu.memory_space<vmem>>, %arg5: memref<256x128xbf16, #tpu.memory_space<vmem>>, %arg6: memref<1x128xf32, #tpu.memory_space<vmem>>, %arg7: memref<6x32xf32, #tpu.memory_space<vmem>>, %arg8: memref<6x32xf32, #tpu.memory_space<vmem>>, %arg9: memref<6x256xf32, #tpu.memory_space<vmem>>) attributes {dimension_semantics = [#tpu.dimension_semantics<arbitrary>], iteration_bounds = array<i64: 1>, scalar_prefetch = 1 : i64, scratch_operands = 1 : i64, tpu.core_type = #tpu.core_type<tc>, window_params = [{pipeline_mode = #tpu.pipeline_mode<synchronous>, transform_indices = @transform_0, window_bounds = array<i64: 6, 32>}, {pipeline_mode = #tpu.pipeline_mode<synchronous>, transform_indices = @transform_1, window_bounds = array<i64: 6, 32>}, {pipeline_mode = #tpu.pipeline_mode<synchronous>, transform_indices = @transform_2, window_bounds = array<i64: 64, 128>}, {pipeline_mode = #tpu.pipeline_mode<synchronous>, transform_indices = @transform_3, window_bounds = array<i64: 256, 128>}, {pipeline_mode = #tpu.pipeline_mode<synchronous>, transform_indices = @transform_4, window_bounds = array<i64: 1, 128>}, {pipeline_mode = #tpu.pipeline_mode<synchronous>, transform_indices = @transform_5, window_bounds = array<i64: 6, 32>}, {pipeline_mode = #tpu.pipeline_mode<synchronous>, transform_indices = @transform_6, window_bounds = array<i64: 6, 32>}]} {
    %c0 = arith.constant 0 : index
    %0 = memref.load %arg1[%c0] : memref<6xi32, #tpu.memory_space<smem>>
    %c0_i32 = arith.constant 0 : i32
    %c63_i32 = arith.constant 63 : i32
    %1 = arith.maxsi %c0_i32, %0 : i32
    %2 = arith.minsi %c63_i32, %1 : i32
    %3 = arith.index_cast %2 : i32 to index
    %c0_0 = arith.constant 0 : index
    %4 = vector.load %arg4[%3, %c0_0] : memref<64x128xf32, #tpu.memory_space<vmem>>, vector<1x128xf32>
    %c0_1 = arith.constant 0 : index
    %c0_2 = arith.constant 0 : index
    %5 = vector.load %arg9[%c0_1, %c0_2] : memref<6x256xf32, #tpu.memory_space<vmem>>, vector<1x128xf32>
    tpu.vector_store %arg9[%c0_1, %c0_2], %4 {strides = array<i32>} : memref<6x256xf32, #tpu.memory_space<vmem>>, vector<1x128xf32>,
    %c1 = arith.constant 1 : index
    %6 = memref.load %arg1[%c1] : memref<6xi32, #tpu.memory_space<smem>>
    %c0_i32_3 = arith.constant 0 : i32
    %c63_i32_4 = arith.constant 63 : i32
    %7 = arith.maxsi %c0_i32_3, %6 : i32
    %8 = arith.minsi %c63_i32_4, %7 : i32
    %9 = arith.index_cast %8 : i32 to index
    %c0_5 = arith.constant 0 : index
    %10 = vector.load %arg4[%9, %c0_5] : memref<64x128xf32, #tpu.memory_space<vmem>>, vector<1x128xf32>
    %c1_6 = arith.constant 1 : index
    %c0_7 = arith.constant 0 : index
    %11 = vector.load %arg9[%c1_6, %c0_7] : memref<6x256xf32, #tpu.memory_space<vmem>>, vector<1x128xf32>
    tpu.vector_store %arg9[%c1_6, %c0_7], %10 {strides = array<i32>} : memref<6x256xf32, #tpu.memory_space<vmem>>, vector<1x128xf32>,
    %c2 = arith.constant 2 : index
    %12 = memref.load %arg1[%c2] : memref<6xi32, #tpu.memory_space<smem>>
    %c0_i32_8 = arith.constant 0 : i32
    %c63_i32_9 = arith.constant 63 : i32
    %13 = arith.maxsi %c0_i32_8, %12 : i32
    %14 = arith.minsi %c63_i32_9, %13 : i32
    %15 = arith.index_cast %14 : i32 to index
    %c0_10 = arith.constant 0 : index
    %16 = vector.load %arg4[%15, %c0_10] : memref<64x128xf32, #tpu.memory_space<vmem>>, vector<1x128xf32>
    %c2_11 = arith.constant 2 : index
    %c0_12 = arith.constant 0 : index
    %17 = vector.load %arg9[%c2_11, %c0_12] : memref<6x256xf32, #tpu.memory_space<vmem>>, vector<1x128xf32>
    tpu.vector_store %arg9[%c2_11, %c0_12], %16 {strides = array<i32>} : memref<6x256xf32, #tpu.memory_space<vmem>>, vector<1x128xf32>,
    %c3 = arith.constant 3 : index
    %18 = memref.load %arg1[%c3] : memref<6xi32, #tpu.memory_space<smem>>
    %c0_i32_13 = arith.constant 0 : i32
    %c63_i32_14 = arith.constant 63 : i32
    %19 = arith.maxsi %c0_i32_13, %18 : i32
    %20 = arith.minsi %c63_i32_14, %19 : i32
    %21 = arith.index_cast %20 : i32 to index
    %c0_15 = arith.constant 0 : index
    %22 = vector.load %arg4[%21, %c0_15] : memref<64x128xf32, #tpu.memory_space<vmem>>, vector<1x128xf32>
    %c3_16 = arith.constant 3 : index
    %c0_17 = arith.constant 0 : index
    %23 = vector.load %arg9[%c3_16, %c0_17] : memref<6x256xf32, #tpu.memory_space<vmem>>, vector<1x128xf32>
    tpu.vector_store %arg9[%c3_16, %c0_17], %22 {strides = array<i32>} : memref<6x256xf32, #tpu.memory_space<vmem>>, vector<1x128xf32>,
    %c4 = arith.constant 4 : index
    %24 = memref.load %arg1[%c4] : memref<6xi32, #tpu.memory_space<smem>>
    %c0_i32_18 = arith.constant 0 : i32
    %c63_i32_19 = arith.constant 63 : i32
    %25 = arith.maxsi %c0_i32_18, %24 : i32
    %26 = arith.minsi %c63_i32_19, %25 : i32
    %27 = arith.index_cast %26 : i32 to index
    %c0_20 = arith.constant 0 : index
    %28 = vector.load %arg4[%27, %c0_20] : memref<64x128xf32, #tpu.memory_space<vmem>>, vector<1x128xf32>
    %c4_21 = arith.constant 4 : index
    %c0_22 = arith.constant 0 : index
    %29 = vector.load %arg9[%c4_21, %c0_22] : memref<6x256xf32, #tpu.memory_space<vmem>>, vector<1x128xf32>
    tpu.vector_store %arg9[%c4_21, %c0_22], %28 {strides = array<i32>} : memref<6x256xf32, #tpu.memory_space<vmem>>, vector<1x128xf32>,
    %c5 = arith.constant 5 : index
    %30 = memref.load %arg1[%c5] : memref<6xi32, #tpu.memory_space<smem>>
    %c0_i32_23 = arith.constant 0 : i32
    %c63_i32_24 = arith.constant 63 : i32
    %31 = arith.maxsi %c0_i32_23, %30 : i32
    %32 = arith.minsi %c63_i32_24, %31 : i32
    %33 = arith.index_cast %32 : i32 to index
    %c0_25 = arith.constant 0 : index
    %34 = vector.load %arg4[%33, %c0_25] : memref<64x128xf32, #tpu.memory_space<vmem>>, vector<1x128xf32>
    %c5_26 = arith.constant 5 : index
    %c0_27 = arith.constant 0 : index
    %35 = vector.load %arg9[%c5_26, %c0_27] : memref<6x256xf32, #tpu.memory_space<vmem>>, vector<1x128xf32>
    tpu.vector_store %arg9[%c5_26, %c0_27], %34 {strides = array<i32>} : memref<6x256xf32, #tpu.memory_space<vmem>>, vector<1x128xf32>,
    %c0_28 = arith.constant 0 : index
    %c0_29 = arith.constant 0 : index
    %36 = vector.load %arg2[%c0_28, %c0_29] : memref<6x32xf32, #tpu.memory_space<vmem>>, vector<6x32xf32>
    %c0_30 = arith.constant 0 : index
    %c128 = arith.constant 128 : index
    %37 = vector.load %arg9[%c0_30, %c128] : memref<6x256xf32, #tpu.memory_space<vmem>>, vector<6x32xf32>
    tpu.vector_store %arg9[%c0_30, %c128], %36 {strides = array<i32>} : memref<6x256xf32, #tpu.memory_space<vmem>>, vector<6x32xf32>,
    %cst = arith.constant 0.000000e+00 : f32
    %38 = vector.broadcast %cst : f32 to vector<6x96xf32>
    %c0_31 = arith.constant 0 : index
    %c160 = arith.constant 160 : index
    %39 = vector.load %arg9[%c0_31, %c160] : memref<6x256xf32, #tpu.memory_space<vmem>>, vector<6x96xf32>
    tpu.vector_store %arg9[%c0_31, %c160], %38 {strides = array<i32>} : memref<6x256xf32, #tpu.memory_space<vmem>>, vector<6x96xf32>,
    %c0_32 = arith.constant 0 : index
    %c0_33 = arith.constant 0 : index
    %40 = vector.load %arg9[%c0_32, %c0_33] : memref<6x256xf32, #tpu.memory_space<vmem>>, vector<6x256xf32>
    %41 = arith.truncf %40 : vector<6x256xf32> to vector<6x256xbf16>
    %c0_34 = arith.constant 0 : index
    %c0_35 = arith.constant 0 : index
    %42 = vector.load %arg5[%c0_34, %c0_35] : memref<256x128xbf16, #tpu.memory_space<vmem>>, vector<256x128xbf16>
    %cst_36 = arith.constant dense<0.000000e+00> : vector<6x128xf32>
    %43 = tpu.matmul %41, %42, %cst_36 {dimension_numbers = #tpu.dot_dimension_numbers<[1], [0], [0], [1], [0, 0, 1, 1], [], []>} : vector<6x256xbf16>, vector<256x128xbf16>, vector<6x128xf32> -> vector<6x128xf32>
    %c0_37 = arith.constant 0 : index
    %c0_38 = arith.constant 0 : index
    %44 = vector.load %arg6[%c0_37, %c0_38] : memref<1x128xf32, #tpu.memory_space<vmem>>, vector<1x128xf32>
    %45 = vector.broadcast %44 : vector<1x128xf32> to vector<6x128xf32>
    %46 = arith.addf %43, %45 : vector<6x128xf32>
    %47 = vector.extract_strided_slice %46 {offsets = [0, 0], sizes = [6, 32], strides = [1, 1]} : vector<6x128xf32> to vector<6x32xf32>
    %48 = arith.negf %47 : vector<6x32xf32>
    %49 = math.exp %48 : vector<6x32xf32>
    %cst_39 = arith.constant 1.000000e+00 : f32
    %50 = vector.broadcast %cst_39 : f32 to vector<6x32xf32>
    %51 = arith.addf %50, %49 : vector<6x32xf32>
    %52 = arith.divf %50, %51 : vector<6x32xf32>
    %53 = vector.extract_strided_slice %46 {offsets = [0, 32], sizes = [6, 32], strides = [1, 1]} : vector<6x128xf32> to vector<6x32xf32>
    %54 = arith.negf %53 : vector<6x32xf32>
    %55 = math.exp %54 : vector<6x32xf32>
    %cst_40 = arith.constant 1.000000e+00 : f32
    %56 = vector.broadcast %cst_40 : f32 to vector<6x32xf32>
    %57 = arith.addf %56, %55 : vector<6x32xf32>
    %58 = arith.divf %56, %57 : vector<6x32xf32>
    %59 = vector.extract_strided_slice %46 {offsets = [0, 64], sizes = [6, 32], strides = [1, 1]} : vector<6x128xf32> to vector<6x32xf32>
    %60 = math.tanh %59 : vector<6x32xf32>
    %61 = vector.extract_strided_slice %46 {offsets = [0, 96], sizes = [6, 32], strides = [1, 1]} : vector<6x128xf32> to vector<6x32xf32>
    %62 = arith.negf %61 : vector<6x32xf32>
    %63 = math.exp %62 : vector<6x32xf32>
    %cst_41 = arith.constant 1.000000e+00 : f32
    %64 = vector.broadcast %cst_41 : f32 to vector<6x32xf32>
    %65 = arith.addf %64, %63 : vector<6x32xf32>
    %66 = arith.divf %64, %65 : vector<6x32xf32>
    %c0_42 = arith.constant 0 : index
    %c0_43 = arith.constant 0 : index
    %67 = vector.load %arg3[%c0_42, %c0_43] : memref<6x32xf32, #tpu.memory_space<vmem>>, vector<6x32xf32>
    %68 = arith.mulf %58, %67 : vector<6x32xf32>
    %69 = arith.mulf %52, %60 : vector<6x32xf32>
    %70 = arith.addf %68, %69 : vector<6x32xf32>
    %71 = math.tanh %70 : vector<6x32xf32>
    %72 = arith.mulf %66, %71 : vector<6x32xf32>
    %c0_44 = arith.constant 0 : index
    %c0_45 = arith.constant 0 : index
    %73 = vector.load %arg7[%c0_44, %c0_45] : memref<6x32xf32, #tpu.memory_space<vmem>>, vector<6x32xf32>
    tpu.vector_store %arg7[%c0_44, %c0_45], %72 {strides = array<i32>} : memref<6x32xf32, #tpu.memory_space<vmem>>, vector<6x32xf32>,
    %c0_46 = arith.constant 0 : index
    %c0_47 = arith.constant 0 : index
    %74 = vector.load %arg8[%c0_46, %c0_47] : memref<6x32xf32, #tpu.memory_space<vmem>>, vector<6x32xf32>
    tpu.vector_store %arg8[%c0_46, %c0_47], %70 {strides = array<i32>} : memref<6x32xf32, #tpu.memory_space<vmem>>, vector<6x32xf32>,
    return
  }
  func.func @transform_0(%arg0: i32, %arg1: memref<6xi32, #tpu.memory_space<smem>>) -> (i32, i32) {
    %c0_i32 = arith.constant 0 : i32
    %c0_i32_0 = arith.constant 0 : i32
    %c0_i32_1 = arith.constant 0 : i32
    return %c0_i32, %c0_i32_0 : i32, i32
  }
  func.func @transform_1(%arg0: i32, %arg1: memref<6xi32, #tpu.memory_space<smem>>) -> (i32, i32) {
    %c0_i32 = arith.constant 0 : i32
    %c0_i32_0 = arith.constant 0 : i32
    %c0_i32_1 = arith.constant 0 : i32
    return %c0_i32, %c0_i32_0 : i32, i32
  }
  func.func @transform_2(%arg0: i32, %arg1: memref<6xi32, #tpu.memory_space<smem>>) -> (i32, i32) {
    %c0_i32 = arith.constant 0 : i32
    %c0_i32_0 = arith.constant 0 : i32
    %c0_i32_1 = arith.constant 0 : i32
    return %c0_i32, %c0_i32_0 : i32, i32
  }
  func.func @transform_3(%arg0: i32, %arg1: memref<6xi32, #tpu.memory_space<smem>>) -> (i32, i32) {
    %c0_i32 = arith.constant 0 : i32
    %c0_i32_0 = arith.constant 0 : i32
    %c0_i32_1 = arith.constant 0 : i32
    return %c0_i32, %c0_i32_0 : i32, i32
  }
  func.func @transform_4(%arg0: i32, %arg1: memref<6xi32, #tpu.memory_space<smem>>) -> (i32, i32) {
    %c0_i32 = arith.constant 0 : i32
    %c0_i32_0 = arith.constant 0 : i32
    %c0_i32_1 = arith.constant 0 : i32
    return %c0_i32, %c0_i32_0 : i32, i32
  }
  func.func @transform_5(%arg0: i32, %arg1: memref<6xi32, #tpu.memory_space<smem>>) -> (i32, i32) {
    %c0_i32 = arith.constant 0 : i32
    %c0_i32_0 = arith.constant 0 : i32
    %c0_i32_1 = arith.constant 0 : i32
    return %c0_i32, %c0_i32_0 : i32, i32
  }
  func.func @transform_6(%arg0: i32, %arg1: memref<6xi32, #tpu.memory_space<smem>>) -> (i32, i32) {
    %c0_i32 = arith.constant 0 : i32
    %c0_i32_0 = arith.constant 0 : i32
    %c0_i32_1 = arith.constant 0 : i32
    return %c0_i32, %c0_i32_0 : i32, i32
  }
}

</mosaic_0001>

<bundles_post_ra>
// kernel: tpu_custom_call.1
= control target key start
LH: loop header
LB: loop body
LE: loop exit
PB: predicated region body
PF: predicated region fallthrough
CT: control target
= control target key end

     0   :  { %s719_s27 = smov [#allocation4]   ;;  %s829_s0 = inlined_call_operand.hbm [shape: s32[6], index: 0, kind: input, shape index: {}]   ;;  %s830_s1 = inlined_call_operand.hbm [shape: f32[6,32], index: 1, kind: input, shape index: {}]   ;;  %s831_s2 = inlined_call_operand.hbm [shape: f32[6,32], index: 2, kind: input, shape index: {}]   ;;  %s832_s3 = inlined_call_operand.hbm [shape: f32[64,128], index: 3, kind: input, shape index: {}]   ;;  %s833_s4 = inlined_call_operand.hbm [shape: bf16[256,128], index: 4, kind: input, shape index: {}]   ;;  %s834_s5 = inlined_call_operand.vmem [shape: f32[1,128], index: 5, kind: input, shape index: {}]   ;;  %s835_s6 = inlined_call_operand.hbm [shape: f32[6,32], index: 6, kind: output, shape index: {0}]   ;;  %s836_s7 = inlined_call_operand.hbm [shape: f32[6,32], index: 7, kind: output, shape index: {1}]  }
   0x1   :  { %s14_s26 = sshll.u32 %s829_s0, 4  ;;  %s15_s26 = int_to_ptr.hbm [resolvable:$true] %s14_s26 }
   0x2   :  { %17 = dma.hbm_to_smem %s15_s26, 16, %s719_s27, [#allocation3] }
   0x3   :  { %707 = dma.done.wait [#allocation3], 16 }
   0x4   :  { %708 = vsyncadd [#allocation3], 4294967280 }
   0x5   :  { %20 = sfence }
   0x6   :  { %21 = vsyncpa [#allocation6], 0 }
   0x7   :  { %22 = vsyncpa [#allocation9], 0 }
   0x8   :  { %23 = vsyncpa [#allocation12], 0 }
   0x9   :  { %24 = vsyncpa [#allocation7], 0  ;;  %s42_s30 = sshll.u32 %s831_s2, 4  ;;  %s43_s30 = int_to_ptr.hbm [resolvable:$true] %s42_s30 }
   0xa   :  { %25 = vsyncpa [#allocation15], 0  ;;  %s720_s8 = smov [#allocation8]   ;;  %s31_s11 = sshll.u32 %s830_s1, 4  ;;  %s32_s11 = int_to_ptr.hbm [resolvable:$true] %s31_s11 }
   0xb   :  { %s44_s9 = sshll.u32 %s720_s8, 4  ;;  %s721_s12 = smov [#allocation5]   ;;  %s45_s9 = int_to_ptr.vmem [resolvable:$true] %s44_s9 }
   0xc   :  { %47 = dma.hbm_to_vmem [thread:$0]  %s43_s30, 128, %s45_s9, [#allocation9]  }
   0xd   :  { %s33_s13 = sshll.u32 %s721_s12, 4  ;;  %s52_s16 = sshll.u32 %s832_s3, 4  ;;  %s34_s13 = int_to_ptr.vmem [resolvable:$true] %s33_s13  ;;  %s53_s16 = int_to_ptr.hbm [resolvable:$true] %s52_s16 }
   0xe   :  { %36 = dma.hbm_to_vmem [thread:$0]  %s32_s11, 128, %s34_s13, [#allocation6]  }
   0xf   :  { %s722_s2 = smov [#allocation10]   ;;  %s65_s20 = sshll.u32 %s833_s4, 4  ;;  %s66_s20 = int_to_ptr.hbm [resolvable:$true] %s65_s20 }
  0x10   :  { %s54_s17 = sshll.u32 %s722_s2, 4  ;;  %s723_s21 = smov 128   ;;  %s55_s17 = int_to_ptr.vmem [resolvable:$true] %s54_s17 }
  0x11   :  { %s724_s1 = smov 8   ;;  %s725_s22 = smov [#allocation11]  }
  0x12   :  { %60 = dma.hbm_to_vmem [thread:$0]  %s53_s16, 1024, %s55_s17, [#allocation9], %s723_s21, %s723_s21, %s724_s1  }
  0x13   :  { %s67_s23 = sshll.u32 %s725_s22, 4  ;;  %s726_s24 = smov 64   ;;  %s68_s23 = int_to_ptr.vmem [resolvable:$true] %s67_s23 }
  0x14   :  { %s727_s25 = smov 4  }
  0x15   :  { %73 = dma.hbm_to_vmem [thread:$0]  %s66_s20, 2048, %s68_s23, [#allocation12], %s726_s24, %s726_s24, %s727_s25  }
  0x16   :  { %709 = dma.done.wait [#allocation6], 128  }
  0x17   :  { %710 = vsyncadd [#allocation6], 4294967168 }
  0x18   :  { %711 = dma.done.wait [#allocation9], 1152  }
  0x19   :  { %712 = vsyncadd [#allocation9], 4294966144 }
  0x1a   :  { %713 = dma.done.wait [#allocation12], 2048  }
  0x1b   :  { %714 = vsyncadd [#allocation12], 4294965248  ;;  %s92_s3 = sld [smem:[#allocation4]]  ;;  %v519_v0 = vld [vmem:[#allocation11 + $0x38] sm:$0xff]  ;;  %v518_v2 = vld [vmem:[#allocation11 + $0x30] sm:$0xff]  ;;  %vm141_vm0 = vcmask 259072  }
  0x1c   :  { %s405_s4 = sld [smem:[#allocation4 + $0x1]]  ;;  %v527_v1 = vld [vmem:[#allocation11 + $0x78] sm:$0xff]  ;;  %281 = vmatpush.bf16.msra.mxu0 %v519_v0  ;;  %v526_v3 = vld [vmem:[#allocation11 + $0x70] sm:$0xff]  ;;  %vm143_vm1 = vcmask 1045760   ;;  %v517_v5 = vld [vmem:[#allocation11 + $0x28] sm:$0xff]  ;;  %v728_v8 = vmov 0.0  }
  0x1d   :  { %s790_s26 = sld [smem:[#allocation4 + $0x2]]  ;;  %294 = vmatpush.bf16.msra.mxu1 %v527_v1  ;;  %v140_v4 = vld [vmem:[#allocation5] sm:$0x3f]  ;;  %v525_v6 = vld [vmem:[#allocation11 + $0x68] sm:$0xff]  ;;  %v516_v10 = vld [vmem:[#allocation11 + $0x20] sm:$0xff]  ;;  %s729_s16 = smov 32  }
  0x1e   :  { %s792_s27 = sld [smem:[#allocation4 + $0x3]]  ;;  %142 = vst.msk [vmem:[#allocation2 + $0x8] sm:$0x3f] %vm141_vm0, %v140_v4  ;;  %v524_v11 = vld [vmem:[#allocation11 + $0x60] sm:$0xff]  ;;  %v515_v13 = vld [vmem:[#allocation11 + $0x18] sm:$0xff]  ;;  %v514_v16 = vld [vmem:[#allocation11 + $0x10] sm:$0xff] }
  0x1f   :  { %s794_s28 = sld [smem:[#allocation4 + $0x4]]  ;;  %144 = vst.msk [vmem:[#allocation2 + $0x8] sm:$0x3f] %vm143_vm1, %v728_v8  ;;  %v523_v14 = vld [vmem:[#allocation11 + $0x58] sm:$0xff]  ;;  %v522_v17 = vld [vmem:[#allocation11 + $0x50] sm:$0xff]  ;;  %v513_v19 = vld [vmem:[#allocation11 + $0x8] sm:$0xff] }
  0x20   :  { %s796_s29 = sld [smem:[#allocation4 + $0x5]]  ;;  %282 = vmatpush.bf16.msra.mxu0 %v518_v2  ;;  %v521_v20 = vld [vmem:[#allocation11 + $0x48] sm:$0xff]  ;;  %v512_v22 = vld [vmem:[#allocation11] sm:$0xff]  ;;  %v327_v36 = vld [vmem:[#allocation8] sm:$0x3f]  ;;  %s731_s2 = smov [#allocation13]  }
  0x21   :  { %p93_p0 = scmp.gt.s32.totalorder %s92_s3, 0  ;;  %p400_p1 = scmp.lt.s32.totalorder %s92_s3, 63  ;;  %295 = vmatpush.bf16.msra.mxu1 %v526_v3  ;;  %v520_v23 = vld [vmem:[#allocation11 + $0x40] sm:$0xff] }
  0x22   :  { %p101_p2 = scmp.gt.s32.totalorder %s405_s4, 0  ;;  %p406_p3 = scmp.lt.s32.totalorder %s405_s4, 63  ;;  %v542_v28 = vld [vmem:[%s834_s5] ss:$0 sm:$0xff] }
  0x23   :  { %s838_s3 = smov (!%p93_p0, %s92_s3), 0  ;;  %p109_p4 = scmp.gt.s32.totalorder %s790_s26, 0 }
  0x24   :  { %s840_s4 = smov (!%p101_p2, %s405_s4), 0  ;;  %s842_s3 = smov (!%p400_p1, %s838_s3), 63  ;;  %283 = vmatpush.bf16.msra.mxu0 %v517_v5 }
  0x25   :  { %s844_s4 = smov (!%p406_p3, %s840_s4), 63  ;;  %s97_s30 = scalar_lea.vmem [#allocation10], %s842_s3  ;;  %296 = vmatpush.bf16.msra.mxu1 %v525_v6 }
  0x26   :  { %v98_v7 = vld [vmem:[%s97_s30] sm:$0x1]  ;;  %p412_p5 = scmp.lt.s32.totalorder %s790_s26, 63  ;;  %s105_s8 = scalar_lea.vmem [#allocation10], %s844_s4  ;;  %v146_v24 = vld [vmem:[#allocation2 + $0x8] sm:$0x3f] }
  0x27   :  { %99 = vst [vmem:[#allocation2] sm:$0x1] %v98_v7  ;;  %v106_v9 = vld [vmem:[%s105_s8] sm:$0x1]  ;;  %s110_s9 = scalar_select %p109_p4, %s790_s26, 0  ;;  %v148_v25 = vpack.c.bf16 %v146_v24, %v146_v24 }
  0x28   :  { %107 = vst [vmem:[#allocation2 + $0x1] sm:$0x1] %v106_v9  ;;  %p117_p6 = scmp.gt.s32.totalorder %s792_s27, 0  ;;  %p418_p7 = scmp.lt.s32.totalorder %s792_s27, 63  ;;  %284 = vmatpush.bf16.msra.mxu0 %v516_v10 }
  0x29   :  { %s846_s9 = smov (!%p412_p5, %s110_s9), 63  ;;  %p125_p8 = scmp.gt.s32.totalorder %s794_s28, 0  ;;  %297 = vmatpush.bf16.msra.mxu1 %v524_v11 }
  0x2a   :  { %s848_s27 = smov (!%p117_p6, %s792_s27), 0  ;;  %s113_s0 = scalar_lea.vmem [#allocation10], %s846_s9 }
  0x2b   :  { %v114_v12 = vld [vmem:[%s113_s0] sm:$0x1]  ;;  %s850_s27 = smov (!%p418_p7, %s848_s27), 63  ;;  %p424_p9 = scmp.lt.s32.totalorder %s794_s28, 63 }
  0x2c   :  { %115 = vst [vmem:[#allocation2 + $0x2] sm:$0x1] %v114_v12  ;;  %s126_s10 = scalar_select %p125_p8, %s794_s28, 0  ;;  %285 = vmatpush.bf16.msra.mxu0 %v515_v13 }
  0x2d   :  { %s121_s11 = scalar_lea.vmem [#allocation10], %s850_s27  ;;  %p133_p10 = scmp.gt.s32.totalorder %s796_s29, 0  ;;  %298 = vmatpush.bf16.msra.mxu1 %v523_v14 }
  0x2e   :  { %v122_v15 = vld [vmem:[%s121_s11] sm:$0x1]  ;;  %p430_p11 = scmp.lt.s32.totalorder %s796_s29, 63  ;;  %s852_s10 = smov (!%p424_p9, %s126_s10), 63 }
  0x2f   :  { %123 = vst [vmem:[#allocation2 + $0x3] sm:$0x1] %v122_v15  ;;  %s854_s29 = smov (!%p133_p10, %s796_s29), 0  ;;  %s129_s12 = scalar_lea.vmem [#allocation10], %s852_s10 }
  0x30   :  { %v130_v18 = vld [vmem:[%s129_s12] sm:$0x1]  ;;  %s856_s29 = smov (!%p430_p11, %s854_s29), 63  ;;  %286 = vmatpush.bf16.msra.mxu0 %v514_v16  ;;  %s730_s5 = smov 96  }
  0x31   :  { %131 = vst [vmem:[#allocation2 + $0x4] sm:$0x1] %v130_v18  ;;  %299 = vmatpush.bf16.msra.mxu1 %v522_v17  ;;  %s137_s13 = scalar_lea.vmem [#allocation10], %s856_s29  ;;  %s364_s17 = sshll.u32 %s731_s2, 4  ;;  %s365_s17 = int_to_ptr.vmem [resolvable:$true] %s364_s17 }
  0x32   :  { %v138_v21 = vld [vmem:[%s137_s13] sm:$0x1]  ;;  %s366_s20 = sshll.u32 %s835_s6, 4  ;;  %s732_s21 = smov [#allocation14]   ;;  %s367_s20 = int_to_ptr.hbm [resolvable:$true] %s366_s20 }
  0x33   :  { %139 = vst [vmem:[#allocation2 + $0x5] sm:$0x1] %v138_v21  ;;  %s375_s1 = sshll.u32 %s732_s21, 4  ;;  %s376_s1 = int_to_ptr.vmem [resolvable:$true] %s375_s1 }
  0x34   :  { %287 = vmatpush.bf16.msra.mxu0 %v513_v19 }
  0x35   :  { %300 = vmatpush.bf16.msra.mxu1 %v521_v20 }
  0x38   :  { %288 = vmatpush.bf16.msra.mxu0 %v512_v22 }
  0x39   :  { %301 = vmatpush.bf16.msra.mxu1 %v520_v23 }
  0x3a   :  { %v145_v26 = vld [vmem:[#allocation2] sm:$0x3f] }
  0x3b   :  { %v147_v27 = vpack.c.bf16 %v145_v26, %v145_v26 }
  0x3c   :  { %302 = vmatmul.bf16.vlgmr.msra.gmra.mxu1 %v148_v25 }
  0x3d   :  { %289 = vmatmul.bf16.vlgmr.msra.gmra.mxu0 %v147_v27 }
  0xb9   :  { %v303_v29 = vpop.f32.mrf.mxu1 }
  0xba   :  { %v290_v30 = vpop.f32.mrf.mxu0 }
  0xbb   :  { %v291_v31 = vadd.f32 %v542_v28, %v290_v30 }
  0xbd   :  { %v304_v32 = vadd.f32 %v303_v29, %v291_v31 }
  0xbf   :  { %543 = vtanh.f32 %v304_v32  ;;  %v499_v37 = vmul.f32 -1.442695, %v304_v32 }
  0xc1   :  { %v305_v33 = vpop.f32.mrf.mxu1  ;;  %545 = vpow2.f32 %v499_v37 }
  0xc2   :  { %v292_v34 = vpop.f32.mrf.mxu0 }
  0xc5   :  { %v544_v35 = vpop.eup %543 }
  0xc6   :  { %334 = vrot.lane.b32.xlu0 %v544_v35, %s726_s24 }
  0xc7   :  { %v546_v38 = vpop.eup %545 }
  0xc8   :  { %v310_v39 = vadd.f32 1.0, %v546_v38 }
  0xca   :  { %547 = vrcp.f32 %v310_v39  ;;  %v322_v45 = vand.u32 2147483648, %v310_v39  ;;  %vm316_vm3 = vweird.f32 %v310_v39  ;;  %v320_v46 = vand.u32 2147483647, %v310_v39 }
  0xcc   :  { %v323_v48 = vor.u32 1.1754944e-38, %v322_v45  ;;  %vm321_vm5 = vcmp.eq.f32.partialorder %v320_v46, 8.507059e+37 }
  0xce   :  { %329 = vrot.lane.b32.xlu0 %v327_v36, %s729_s16 }
  0xd0   :  { %v548_v40 = vpop.eup %547 }
  0xd1   :  { %v312_v41 = vmul.f32 %v548_v40, %v310_v39  ;;  %vm317_vm2 = vweird.f32 %v548_v40 }
  0xd2   :  { %vm318_vm4 = vmor %vm316_vm3, %vm317_vm2 }
  0xd3   :  { %v313_v42 = vsub.f32 1.0, %v312_v41 }
  0xd5   :  { %v314_v43 = vmul.f32 %v548_v40, %v313_v42 }
  0xd7   :  { %v315_v44 = vadd.f32 %v548_v40, %v314_v43 }
  0xd9   :  { %v319_v47 = vsel %vm318_vm4, %v548_v40, %v315_v44 }
  0xda   :  { %v324_v50 = vsel %vm321_vm5, %v323_v48, %v319_v47 }
 0x138   :  { %v335_v49 = vpop.permute.xlu0 %334 }
 0x139   :  { %v337_v51 = vmul.f32 %v335_v49, %v324_v50 }
 0x13b   :  { %339 = vrot.lane.b32.xlu1 %v337_v51, %s729_s16 }
 0x140   :  { %v330_v52 = vpop.permute.xlu0 %329 }
 0x141   :  { %v332_v53 = vmul.f32 %v330_v52, %v324_v50 }
 0x1ad   :  { %v340_v54 = vpop.permute.xlu1 %339 }
 0x1ae   :  { %v342_v55 = vadd.f32 %v340_v54, %v332_v53 }
 0x1b0   :  { %549 = vtanh.f32 %v342_v55 }
 0x1b6   :  { %v550_v56 = vpop.eup %549 }
 0x1b7   :  { %345 = vrot.lane.b32.xlu1 %v550_v56, %s726_s24  ;;  %s377_s24 = sshll.u32 %s836_s7, 4  ;;  %s378_s24 = int_to_ptr.hbm [resolvable:$true] %s377_s24 }
 0x229   :  { %v346_v57 = vpop.permute.xlu1 %345 }
 0x22a   :  { %v348_v58 = vmul.f32 %v346_v57, %v324_v50 }
 0x22c   :  { %350 = vrot.lane.b32.xlu2 %v348_v58, %s729_s16 }
 0x234   :  { %355 = vrot.lane.b32.xlu2 %v342_v55, %s730_s5 }
 0x286   :  { %v351_v59 = vpop.permute.xlu2 %350 }
 0x287   :  { %353 = vst.msk [vmem:[#allocation13] sm:$0x3f] %vm141_vm0, %v351_v59 }
 0x288   :  { %369 = dma.vmem_to_hbm [thread:$0]  %s365_s17, 128, %s367_s20, [#allocation7]  }
 0x28e   :  { %v356_v60 = vpop.permute.xlu2 %355 }
 0x28f   :  { %358 = vst.msk [vmem:[#allocation14] sm:$0x3f] %vm141_vm0, %v356_v60 }
 0x290   :  { %380 = dma.vmem_to_hbm [thread:$0]  %s376_s1, 128, %s378_s24, [#allocation15]  }
 0x291   :  { %715 = dma.done.wait [#allocation7], 128  }
 0x292   :  { %716 = vsyncadd [#allocation7], 4294967168 }
 0x293   :  { %717 = dma.done.wait [#allocation15], 128  }
 0x294   :  { %718 = vsyncadd [#allocation15], 4294967168 }
 0x295   :  { %389 = vsyncpa [#allocation6], 1 }
 0x296   :  { %390 = vsyncpa [#allocation9], 1 }
 0x297   :  { %391 = vsyncpa [#allocation12], 1 }
 0x298   :  { %392 = vsyncpa [#allocation7], 1 }
 0x299   :  { %393 = vsyncpa [#allocation15], 1 }

</bundles_post_ra>
